<compile_context>
chip_gen: v5e
topology: v5e:2x2
jax: 0.10.0
libtpu: 0.0.40
codegen_flags: <defaults>
</compile_context>

<pallas_src>
import jax
import jax.numpy as jnp
from jax.experimental import pallas as pl
from jax.experimental.pallas import tpu as pltpu


def _copy_kernel(x_ref, o_ref):
    # Straight VMEM tile copy (DMA in -> vreg -> DMA out, fully pipelined).
    o_ref[...] = x_ref[...]


def identity_map(x, *args, **kwargs):
    """Faithful IdentityMap.forward: identity is a no-op -> no kernel launch."""
    return x


def identity_copy_pallas(x):
    """Tuned Pallas HBM->HBM copy, used only when a fresh buffer is required."""
    orig_shape = x.shape
    n = x.size
    itemsize = jnp.dtype(x.dtype).itemsize

    # Pick a lane-dense trailing dim (multiple of 128, prefer 1024 for long
    # unmasked vst runs).
    lane = None
    for cand in (1024, 512, 256, 128):
        if n % cand == 0:
            lane = cand
            break

    if lane is None:
        # Rare odd-sized fallback: single full-array block copy (block == full
        # array dims, so no (8,128) divisibility constraint applies).
        return pl.pallas_call(
            _copy_kernel,
            out_shape=jax.ShapeDtypeStruct(x.shape, x.dtype),
        )(x)

    rows = n // lane

    # Target ~2 MiB per block: 2 arrays x 2 buffers -> <= 8 MiB VMEM.
    target_block_bytes = 2 * 1024 * 1024
    cap_rows = max(8, (target_block_bytes // (lane * itemsize)) // 8 * 8)

    if rows <= cap_rows:
        block_rows = rows            # block == full dim -> no (8,128) constraint
    else:
        block_rows = cap_rows        # multiple of 8; lane is a multiple of 128
    grid = (pl.cdiv(rows, block_rows),)

    x2 = x.reshape(rows, lane)
    out2 = pl.pallas_call(
        _copy_kernel,
        out_shape=jax.ShapeDtypeStruct((rows, lane), x.dtype),
        grid=grid,
        in_specs=[pl.BlockSpec((block_rows, lane), lambda i: (i, 0))],
        out_specs=pl.BlockSpec((block_rows, lane), lambda i: (i, 0)),
        compiler_params=pltpu.CompilerParams(
            dimension_semantics=("parallel",),
            vmem_limit_bytes=32 * 1024 * 1024,
        ),
    )(x2)
    return out2.reshape(orig_shape)


if __name__ == "__main__":
    key = jax.random.PRNGKey(0)
    B, S, H = 2, 8, 32
    x = jax.random.normal(key, (B, S, H), dtype=jnp.float32)

    # Primary (module-faithful, zero-cost) path.
    y_fast = identity_map(x)
    assert y_fast is x

    # Tuned Pallas copy path (exercised so the kernel actually compiles/runs).
    y = identity_copy_pallas(x)
    jax.block_until_ready(y)

    assert y.shape == x.shape and y.dtype == x.dtype
    assert bool(jnp.all(y == x))
    print("KERNEL_OK")
</pallas_src>

<mosaic_0001>
module attributes {stable_mosaic.version = 11 : i64} {
  func.func @_copy_kernel(%arg0: i32, %arg1: memref<1x512xf32, #tpu.memory_space<vmem>>, %arg2: memref<1x512xf32, #tpu.memory_space<vmem>>) attributes {dimension_semantics = [#tpu.dimension_semantics<parallel>], iteration_bounds = array<i64: 1>, scalar_prefetch = 0 : i64, scratch_operands = 0 : i64, tpu.core_type = #tpu.core_type<tc>, window_params = [{transform_indices = @transform_0, window_bounds = array<i64: 1, 512>}, {transform_indices = @transform_1, window_bounds = array<i64: 1, 512>}]} {
    %c0 = arith.constant 0 : index
    %c0_0 = arith.constant 0 : index
    %0 = vector.load %arg1[%c0, %c0_0] : memref<1x512xf32, #tpu.memory_space<vmem>>, vector<1x512xf32>
    %c0_1 = arith.constant 0 : index
    %c0_2 = arith.constant 0 : index
    %1 = vector.load %arg2[%c0_1, %c0_2] : memref<1x512xf32, #tpu.memory_space<vmem>>, vector<1x512xf32>
    tpu.vector_store %arg2[%c0_1, %c0_2], %0 {strides = array<i32>} : memref<1x512xf32, #tpu.memory_space<vmem>>, vector<1x512xf32>,
    return
  }
  func.func @transform_0(%arg0: i32) -> (i32, i32) {
    %c0_i32 = arith.constant 0 : i32
    %c0_i32_0 = arith.constant 0 : i32
    return %arg0, %c0_i32 : i32, i32
  }
  func.func @transform_1(%arg0: i32) -> (i32, i32) {
    %c0_i32 = arith.constant 0 : i32
    %c0_i32_0 = arith.constant 0 : i32
    return %arg0, %c0_i32 : i32, i32
  }
}

</mosaic_0001>

<bundles_post_ra>
// kernel: tpu_custom_call.1
= control target key start
LH: loop header
LB: loop body
LE: loop exit
PB: predicated region body
PF: predicated region fallthrough
CT: control target
= control target key end

     0   :  { %6 = vsyncpa [#allocation3], 0  ;;  %s118_s0 = inlined_call_operand.hbm [shape: f32[1,512], index: 0, kind: input, shape index: {}]   ;;  %s119_s1 = inlined_call_operand.hbm [shape: f32[1,512], index: 1, kind: output, shape index: {}]  }
   0x1   :  { %7 = vsyncpa [#allocation4], 0  ;;  %s13_s8 = sshll.u32 %s118_s0, 4  ;;  %s100_s9 = smov [#allocation2]   ;;  %s14_s8 = int_to_ptr.hbm [resolvable:$true] %s13_s8 }
   0x2   :  { %s15_s10 = sshll.u32 %s100_s9, 4  ;;  %s16_s10 = int_to_ptr.vmem [resolvable:$true] %s15_s10 }
   0x3   :  { %18 = dma.hbm_to_vmem [thread:$0]  %s14_s8, 64, %s16_s10, [#allocation3]  }
   0x4   :  { %96 = dma.done.wait [#allocation3], 64  }
   0x5   :  { %97 = vsyncadd [#allocation3], 4294967232  ;;  %v24_v0 = vlaneseq  ;;  %s101_s11 = smov [#allocation5]   ;;  %s36_s15 = sshll.u32 %s119_s1, 4  ;;  %v23_v1 = vld [vmem:[#allocation2] sm:$0xf]  ;;  %s37_s15 = int_to_ptr.hbm [resolvable:$true] %s36_s15 }
   0x6   :  { %s34_s12 = sshll.u32 %s101_s11, 4  ;;  %s35_s12 = int_to_ptr.vmem [resolvable:$true] %s34_s12 }
   0x7   :  { %vm26_vm0 = vcmp.lt.s32.totalorder %v24_v0, 512 }
   0x8   :  { %28 = vst.msk [vmem:[#allocation5] sm:$0xf] %vm26_vm0, %v23_v1 }
   0x9   :  { %39 = dma.vmem_to_hbm [thread:$0]  %s35_s12, 64, %s37_s15, [#allocation4]  }
   0xa   :  { %98 = dma.done.wait [#allocation4], 64  }
   0xb   :  { %99 = vsyncadd [#allocation4], 4294967232 }
   0xc   :  { %44 = vsyncpa [#allocation3], 1 }
   0xd   :  { %45 = vsyncpa [#allocation4], 1 }

</bundles_post_ra>
